<compile_context>
chip_gen: v7x
topology: tpu7x:2x2x1
jax: 0.10.0
libtpu: 0.0.40
codegen_flags: <defaults>
</compile_context>

<pallas_src>
import functools

import jax
import jax.numpy as jnp
from jax.experimental import pallas as pl
from jax.experimental.pallas import tpu as pltpu

_LANE = 128


def _round_up(x, m):
    return (x + m - 1) // m * m


def _sublane_multiple(itemsize):
    # Rows per native vreg tile: 8 (f32), 16 (bf16), 32 (int8 / fp8).
    return {4: 8, 2: 16, 1: 32}.get(itemsize, 8)


def _vmem_info():
    """(physical VMEM per core, usable scoped-VMEM limit) for this generation."""
    try:
        cap = int(pltpu.get_tpu_info().vmem_capacity_bytes)
    except Exception:
        cap = 64 << 20        # conservative default: v7x has 64 MiB per TensorCore
    scoped = max(min(cap * 3 // 4, cap - (8 << 20)), 16 << 20)
    return cap, scoped


# --------------------------- fused single-pass kernel ------------------------


def _esa_fused_kernel(w_ref, b_ref, x_ref, o_ref):
    # w_ref: (k,) f32 SMEM ; b_ref: (1,) f32 SMEM
    # x_ref / o_ref: (1, C, HW) x.dtype VMEM — one full batch slab.
    C = x_ref.shape[1]
    HW = x_ref.shape[2]
    k = w_ref.shape[0]
    pad = (k - 1) // 2

    x = x_ref[...]
    # Channel means, f32 accumulation.  (C, 1): C on the sublane axis.
    mcol = (jnp.sum(x.astype(jnp.float32), axis=-1, keepdims=True)
            * (1.0 / HW)).reshape(C, 1)

    # k-tap zero-padded cross-correlation over the channel axis (+ bias), using
    # iota/where masks and reductions only: full f32 precision on the VPU (no
    # MXU bf16 truncation) and no cross-sublane roll/concat of tiny vectors.
    ci = jax.lax.broadcasted_iota(jnp.int32, (C, C), 0)    # output channel (sublane)
    cj = jax.lax.broadcasted_iota(jnp.int32, (C, C), 1)    # source channel (lane)
    # Move the means onto the lane axis: mrow[0, c'] = mean[c'].
    mrow = jnp.sum(jnp.where(ci == cj, mcol, 0.0), axis=0, keepdims=True)   # (1, C)
    # Banded conv weights: band[c, c'] = w[c' - c + pad] inside the band, else 0.
    d = cj - ci + pad
    band = jnp.zeros((C, C), jnp.float32)
    for i in range(k):                                     # k is small and static
        band = jnp.where(d == i, w_ref[i], band)
    y = jnp.sum(band * mrow, axis=1, keepdims=True) + b_ref[0]              # (C, 1)

    scale = jax.nn.sigmoid(y).reshape(1, C, 1)             # (1, C, 1) f32
    # Multiply in x's dtype (bf16 stays bf16: halves VPU work / vreg pressure).
    o_ref[...] = (x * scale.astype(x.dtype)).astype(o_ref.dtype)


# --------------------------- two-pass fallback kernels -----------------------


def _pool_sum_kernel(x_ref, sum_ref, *, hw, mask_last):
    # x_ref: (R, thw) x.dtype ; sum_ref: (R, 1) f32, resident over the HW axis.
    t = pl.program_id(1)
    thw = x_ref.shape[1]

    @pl.when(t == 0)
    def _():
        sum_ref[...] = jnp.zeros_like(sum_ref)

    def _accumulate_full():
        sum_ref[...] += jnp.sum(x_ref[...].astype(jnp.float32), axis=-1,
                                keepdims=True)

    if mask_last:
        # Only the final HW tile is partial: keep the iota/compare/select off
        # the interior tiles (frees VALU slots / vregs there).
        n_t = pl.num_programs(1)
        pl.when(t < n_t - 1)(_accumulate_full)

        @pl.when(t == n_t - 1)
        def _():
            xv = x_ref[...].astype(jnp.float32)
            pos = t * thw + jax.lax.broadcasted_iota(jnp.int32, xv.shape, 1)
            xv = jnp.where(pos < hw, xv, 0.0)
            sum_ref[...] += jnp.sum(xv, axis=-1, keepdims=True)
    else:
        _accumulate_full()


def _scale_kernel(x_ref, s_ref, o_ref):
    # x_ref: (R, thw) ; s_ref: (R, 1) already cast to x.dtype ; o_ref: (R, thw).
    o_ref[...] = (x_ref[...] * s_ref[...]).astype(o_ref.dtype)


# ------------------------------------ wrapper --------------------------------


def esa_forward(x, conv_weight, conv_bias, *, donate_x=False,
                force_two_pass=False):
    """ESA forward. x: (B, C, H, W); conv_weight: (1, 1, k) odd k; bias: (1,).

    donate_x: set True only when x's buffer may be reused in place (donated jit
    argument or intermediate inside a larger model); otherwise aliasing would
    force XLA to insert a defensive copy of x.
    """
    B, C, H, W = x.shape
    HW = H * W
    itemsize = jnp.dtype(x.dtype).itemsize
    w_vec = conv_weight.reshape(-1).astype(jnp.float32)
    b_vec = conv_bias.reshape(-1).astype(jnp.float32)
    k = int(w_vec.shape[0])
    if k % 2 != 1:
        raise ValueError("ESA requires an odd Conv1d kernel_size ('same' padding).")
    pad = (k - 1) // 2

    cap, scoped = _vmem_info()
    sub = _sublane_multiple(itemsize)

    # --------------- Fused single-pass path: 2|x| HBM traffic. ---------------
    c_pad = _round_up(C, sub)
    hw_pad = _round_up(HW, _LANE)
    slab = c_pad * hw_pad * itemsize                       # one (C, HW) batch block
    conv_scratch = 5 * _round_up(C, 8) * _round_up(C, _LANE) * 4   # (C,C) temporaries
    fused_need = 4 * slab + c_pad * hw_pad * 4 + conv_scratch + (2 << 20)
    if (not force_two_pass) and C <= 512 and fused_need <= scoped:
        x_flat = x.reshape(B, C, HW)
        out_flat = pl.pallas_call(
            _esa_fused_kernel,
            out_shape=jax.ShapeDtypeStruct((B, C, HW), x.dtype),
            grid=(B,),
            in_specs=[
                pl.BlockSpec(memory_space=pltpu.MemorySpace.SMEM),   # conv weights
                pl.BlockSpec(memory_space=pltpu.MemorySpace.SMEM),   # conv bias
                pl.BlockSpec((1, C, HW), lambda b: (b, 0, 0)),
            ],
            out_specs=pl.BlockSpec((1, C, HW), lambda b: (b, 0, 0)),
            input_output_aliases=({2: 0} if donate_x else {}),
            # TODO(synk): on v7x with B == 1 both TensorCores cannot share this
            # grid; a 2-way parallel split of the HW reduction would be needed.
            compiler_params=pltpu.CompilerParams(
                dimension_semantics=("parallel",),
                vmem_limit_bytes=int(min(max(fused_need, 4 << 20), scoped))),
        )(w_vec, b_vec, x_flat)
        return out_flat.reshape(B, C, H, W)

    # -------------- Fallback two-pass path: (B*C, HW) row layout. ------------
    BC = B * C
    x2 = x.reshape(BC, HW)
    # Generation-aware tile budget: ~16 MiB of live blocks on 64 MiB-VMEM chips
    # (v7x), ~32 MiB on 128 MiB-VMEM chips (v5e/v6e).
    total_budget = (16 << 20) if cap <= (64 << 20) else (32 << 20)
    per_block = max(total_budget // 4, 1 << 20)
    R = min(_round_up(BC, sub), 256)                       # sublane-dense rows
    thw = max(_LANE, per_block // (R * itemsize) // _LANE * _LANE)
    thw = min(thw, hw_pad)                                 # lane-dense HW tile
    n_rows = pl.cdiv(BC, R)
    n_t = pl.cdiv(HW, thw)
    blk = R * thw * itemsize

    # Pass 1: per-(b, c) channel sums; f32 accumulator resident over the HW axis.
    sums = pl.pallas_call(
        functools.partial(_pool_sum_kernel, hw=HW, mask_last=(HW % thw != 0)),
        out_shape=jax.ShapeDtypeStruct((BC, 1), jnp.float32),
        grid=(n_rows, n_t),
        in_specs=[pl.BlockSpec((R, thw), lambda r, t: (r, t))],
        out_specs=pl.BlockSpec((R, 1), lambda r, t: (r, 0)),
        compiler_params=pltpu.CompilerParams(
            dimension_semantics=("parallel", "arbitrary"),
            vmem_limit_bytes=int(min(max(2 * blk + (4 << 20), 4 << 20), scoped))),
    )(x2)

    # O(B*C) epilogue in plain JAX: mean, k-tap zero-padded conv over C (+bias),
    # sigmoid; scale cast to x.dtype once so pass 2 multiplies natively.
    mean = sums.reshape(B, C) * (1.0 / HW)
    mp = jnp.pad(mean, ((0, 0), (pad, pad)))
    y = b_vec
    for i in range(k):
        y = y + w_vec[i] * mp[:, i:i + C]
    scale = jax.nn.sigmoid(y).reshape(BC, 1).astype(x.dtype)

    # Pass 2: out = x * scale, fully parallel (megacore-shardable).
    # TODO(synk): if a trace shows inter-step DMA bubbles, add
    # pipeline_mode=pl.Buffered(3) on the x BlockSpecs of both passes.
    out2 = pl.pallas_call(
        _scale_kernel,
        out_shape=jax.ShapeDtypeStruct((BC, HW), x.dtype),
        grid=(n_rows, n_t),
        in_specs=[pl.BlockSpec((R, thw), lambda r, t: (r, t)),
                  pl.BlockSpec((R, 1), lambda r, t: (r, 0))],
        out_specs=pl.BlockSpec((R, thw), lambda r, t: (r, t)),
        input_output_aliases=({0: 0} if donate_x else {}),
        compiler_params=pltpu.CompilerParams(
            dimension_semantics=("parallel", "parallel"),
            vmem_limit_bytes=int(min(max(4 * blk + (4 << 20), 4 << 20), scoped))),
    )(x2, scale)
    return out2.reshape(B, C, H, W)


def esa_reference(x, conv_weight, conv_bias):
    """Pure-JAX reference mirroring the PyTorch forward (f32 math)."""
    B, C, H, W = x.shape
    m = jnp.mean(x.astype(jnp.float32), axis=(2, 3))            # (B, C)
    w = conv_weight.reshape(-1).astype(jnp.float32)
    k = w.shape[0]
    pad = (k - 1) // 2
    mp = jnp.pad(m, ((0, 0), (pad, pad)))
    y = conv_bias.reshape(-1).astype(jnp.float32)
    for i in range(k):
        y = y + w[i] * mp[:, i:i + C]
    s = jax.nn.sigmoid(y)
    return x.astype(jnp.float32) * s[:, :, None, None]


if __name__ == "__main__":
    key = jax.random.PRNGKey(0)
    kx, kw, kb = jax.random.split(key, 3)

    B, C, H, W = 2, 4, 16, 16
    x = jax.random.normal(kx, (B, C, H, W), dtype=jnp.float32)
    # Conv1d(1, 1, kernel_size=3) parameters, deterministic init.
    conv_weight = jax.random.normal(kw, (1, 1, 3), dtype=jnp.float32) * 0.5
    conv_bias = jax.random.normal(kb, (1,), dtype=jnp.float32) * 0.1

    fwd = jax.jit(esa_forward)

    # Fused path, f32.
    out = jax.block_until_ready(fwd(x, conv_weight, conv_bias))
    ref = esa_reference(x, conv_weight, conv_bias)
    assert out.shape == (B, C, H, W) and out.dtype == jnp.float32
    assert jnp.allclose(out, ref, atol=1e-5, rtol=1e-5), "fused f32 mismatch"

    # Fused path, bf16 I/O (bf16 multiply in-kernel; pool / conv / sigmoid in f32).
    x_bf16 = x.astype(jnp.bfloat16)
    out_bf16 = jax.block_until_ready(fwd(x_bf16, conv_weight, conv_bias))
    ref_bf16 = esa_reference(x_bf16, conv_weight, conv_bias)
    assert out_bf16.dtype == jnp.bfloat16
    assert jnp.allclose(out_bf16.astype(jnp.float32), ref_bf16,
                        atol=3e-2, rtol=3e-2), "fused bf16 mismatch"

    # Fused path with a non-128-multiple spatial size (masked tail reduction).
    Hs = Ws = 15
    xs = jax.random.normal(kx, (B, C, Hs, Ws), dtype=jnp.float32)
    out_s = jax.block_until_ready(fwd(xs, conv_weight, conv_bias))
    ref_s = esa_reference(xs, conv_weight, conv_bias)
    assert jnp.allclose(out_s, ref_s, atol=1e-5, rtol=1e-5), "fused odd-HW mismatch"

    # Forced two-pass fallback path (tiled pool + scale kernels, masked last tile).
    fwd2 = jax.jit(functools.partial(esa_forward, force_two_pass=True))
    out2 = jax.block_until_ready(fwd2(xs, conv_weight, conv_bias))
    assert jnp.allclose(out2, ref_s, atol=1e-5, rtol=1e-5), "two-pass mismatch"

    print("KERNEL_OK")
</pallas_src>

<mosaic_0001>
module attributes {stable_mosaic.version = 11 : i64} {
  func.func @_esa_fused_kernel(%arg0: i32, %arg1: memref<3xf32, #tpu.memory_space<smem>>, %arg2: memref<1xf32, #tpu.memory_space<smem>>, %arg3: memref<1x4x256xf32, #tpu.memory_space<vmem>>, %arg4: memref<1x4x256xf32, #tpu.memory_space<vmem>>) attributes {dimension_semantics = [#tpu.dimension_semantics<parallel>], iteration_bounds = array<i64: 2>, scalar_prefetch = 0 : i64, scratch_operands = 0 : i64, tpu.core_type = #tpu.core_type<tc>, window_params = [{transform_indices = @transform_0, window_bounds = array<i64: 3>}, {transform_indices = @transform_1, window_bounds = array<i64: 1>}, {transform_indices = @transform_2, window_bounds = array<i64: 1, 4, 256>}, {transform_indices = @transform_3, window_bounds = array<i64: 1, 4, 256>}]} {
    %c0 = arith.constant 0 : index
    %c0_0 = arith.constant 0 : index
    %c0_1 = arith.constant 0 : index
    %0 = vector.load %arg3[%c0, %c0_0, %c0_1] : memref<1x4x256xf32, #tpu.memory_space<vmem>>, vector<1x4x256xf32>
    %cst = arith.constant dense<0.000000e+00> : vector<1x4xf32>
    %1 = vector.multi_reduction <add>, %0, %cst [2] : vector<1x4x256xf32> to vector<1x4xf32>
    %2 = vector.shape_cast %1 : vector<1x4xf32> to vector<1x4x1xf32>
    %cst_2 = arith.constant 3.906250e-03 : f32
    %3 = vector.broadcast %cst_2 : f32 to vector<1x4x1xf32>
    %4 = arith.mulf %2, %3 : vector<1x4x1xf32>
    %5 = vector.shape_cast %4 : vector<1x4x1xf32> to vector<4x1xf32>
    %6 = tpu.iota {dimensions = array<i32: 0>} : vector<4x4xi32>
    %7 = tpu.iota {dimensions = array<i32: 1>} : vector<4x4xi32>
    %8 = arith.cmpi eq, %6, %7 : vector<4x4xi32>
    %cst_3 = arith.constant 0.000000e+00 : f32
    %9 = vector.shape_cast %5 : vector<4x1xf32> to vector<4x1xf32>
    %10 = vector.broadcast %9 : vector<4x1xf32> to vector<4x4xf32>
    %11 = vector.broadcast %cst_3 : f32 to vector<4x4xf32>
    %12 = arith.select %8, %10, %11 : vector<4x4xi1>, vector<4x4xf32>
    %cst_4 = arith.constant dense<0.000000e+00> : vector<4xf32>
    %13 = vector.multi_reduction <add>, %12, %cst_4 [0] : vector<4x4xf32> to vector<4xf32>
    %14 = vector.shape_cast %13 : vector<4xf32> to vector<1x4xf32>
    %15 = arith.subi %7, %6 : vector<4x4xi32>
    %c1_i32 = arith.constant 1 : i32
    %16 = vector.broadcast %c1_i32 : i32 to vector<4x4xi32>
    %17 = arith.addi %15, %16 : vector<4x4xi32>
    %cst_5 = arith.constant 0.000000e+00 : f32
    %18 = vector.broadcast %cst_5 : f32 to vector<4x4xf32>
    %c0_i32 = arith.constant 0 : i32
    %19 = vector.broadcast %c0_i32 : i32 to vector<4x4xi32>
    %20 = arith.cmpi eq, %17, %19 : vector<4x4xi32>
    %c0_6 = arith.constant 0 : index
    %21 = memref.load %arg1[%c0_6] : memref<3xf32, #tpu.memory_space<smem>>
    %22 = vector.broadcast %21 : f32 to vector<4x4xf32>
    %23 = arith.select %20, %22, %18 : vector<4x4xi1>, vector<4x4xf32>
    %c1_i32_7 = arith.constant 1 : i32
    %24 = vector.broadcast %c1_i32_7 : i32 to vector<4x4xi32>
    %25 = arith.cmpi eq, %17, %24 : vector<4x4xi32>
    %c1 = arith.constant 1 : index
    %26 = memref.load %arg1[%c1] : memref<3xf32, #tpu.memory_space<smem>>
    %27 = vector.broadcast %26 : f32 to vector<4x4xf32>
    %28 = arith.select %25, %27, %23 : vector<4x4xi1>, vector<4x4xf32>
    %c2_i32 = arith.constant 2 : i32
    %29 = vector.broadcast %c2_i32 : i32 to vector<4x4xi32>
    %30 = arith.cmpi eq, %17, %29 : vector<4x4xi32>
    %c2 = arith.constant 2 : index
    %31 = memref.load %arg1[%c2] : memref<3xf32, #tpu.memory_space<smem>>
    %32 = vector.broadcast %31 : f32 to vector<4x4xf32>
    %33 = arith.select %30, %32, %28 : vector<4x4xi1>, vector<4x4xf32>
    %34 = vector.broadcast %14 : vector<1x4xf32> to vector<4x4xf32>
    %35 = arith.mulf %33, %34 : vector<4x4xf32>
    %cst_8 = arith.constant dense<0.000000e+00> : vector<4xf32>
    %36 = vector.multi_reduction <add>, %35, %cst_8 [1] : vector<4x4xf32> to vector<4xf32>
    %37 = vector.shape_cast %36 : vector<4xf32> to vector<4x1xf32>
    %c0_9 = arith.constant 0 : index
    %38 = memref.load %arg2[%c0_9] : memref<1xf32, #tpu.memory_space<smem>>
    %39 = vector.broadcast %38 : f32 to vector<4x1xf32>
    %40 = arith.addf %37, %39 : vector<4x1xf32>
    %41 = arith.negf %40 : vector<4x1xf32>
    %42 = math.exp %41 : vector<4x1xf32>
    %cst_10 = arith.constant 1.000000e+00 : f32
    %43 = vector.broadcast %cst_10 : f32 to vector<4x1xf32>
    %44 = arith.addf %43, %42 : vector<4x1xf32>
    %45 = arith.divf %43, %44 : vector<4x1xf32>
    %46 = vector.shape_cast %45 : vector<4x1xf32> to vector<1x4x1xf32>
    %47 = vector.broadcast %46 : vector<1x4x1xf32> to vector<1x4x256xf32>
    %48 = arith.mulf %0, %47 : vector<1x4x256xf32>
    %c0_11 = arith.constant 0 : index
    %c0_12 = arith.constant 0 : index
    %c0_13 = arith.constant 0 : index
    %49 = vector.load %arg4[%c0_11, %c0_12, %c0_13] : memref<1x4x256xf32, #tpu.memory_space<vmem>>, vector<1x4x256xf32>
    tpu.vector_store %arg4[%c0_11, %c0_12, %c0_13], %48 {strides = array<i32>} : memref<1x4x256xf32, #tpu.memory_space<vmem>>, vector<1x4x256xf32>,
    return
  }
  func.func @transform_0(%arg0: i32) -> i32 {
    %c0_i32 = arith.constant 0 : i32
    %c0_i32_0 = arith.constant 0 : i32
    return %c0_i32 : i32
  }
  func.func @transform_1(%arg0: i32) -> i32 {
    %c0_i32 = arith.constant 0 : i32
    %c0_i32_0 = arith.constant 0 : i32
    return %c0_i32 : i32
  }
  func.func @transform_2(%arg0: i32) -> (i32, i32, i32) {
    %c0_i32 = arith.constant 0 : i32
    %c0_i32_0 = arith.constant 0 : i32
    %c0_i32_1 = arith.constant 0 : i32
    return %arg0, %c0_i32, %c0_i32_0 : i32, i32, i32
  }
  func.func @transform_3(%arg0: i32) -> (i32, i32, i32) {
    %c0_i32 = arith.constant 0 : i32
    %c0_i32_0 = arith.constant 0 : i32
    %c0_i32_1 = arith.constant 0 : i32
    return %arg0, %c0_i32, %c0_i32_0 : i32, i32, i32
  }
}

</mosaic_0001>

<bundles_post_ra>
// kernel: esa_forward.1
= control target key start
LH: loop header
LB: loop body
LE: loop exit
PB: predicated region body
PF: predicated region fallthrough
CT: control target
= control target key end

     0   :  { %s451_s0 = inlined_call_operand.vmem [shape: f32[3], index: 0, kind: input, shape index: {}]   ;;  %s452_s1 = inlined_call_operand.<no memory space> [shape: f32[1], index: 1, kind: input, shape index: {}]   ;;  %s453_s2 = inlined_call_operand.vmem [shape: f32[2,4,256], index: 2, kind: input, shape index: {}]   ;;  %s454_s3 = inlined_call_operand.vmem [shape: f32[2,4,256], index: 3, kind: output, shape index: {}]  }
   0x1   :  { %8 = sst [smem:[#allocation2]] %s452_s1 }
   0x2   :  { %9 = vsyncpa [#allocation4], 0  ;;  %s411_s14 = smov 0  }
   0x3 LB: > { %s316_s15 = sadd.s32 4294967295, %s384_s14   ;;  %p318_p0 = scmp.ge.s32.totalorder %s384_s14, 1  ;;  %s384_s14 = sphi %s411_s14, %s15_s14  }
   0x4   : > { %p114_p1 = scmp.lt.s32.totalorder %s384_s14, 3  ;;  %s127_s18 = sshll.u32 %s451_s0, 4  ;;  %s128_s18 = int_to_ptr.vmem [resolvable:$true] %s127_s18 }
   0x5   : > { %p342_p3 = scmp.eq.s32.totalorder %s316_s15, 0  ;;  %s359_s19 = scalar_lea.vmem %s128_s18, 16 }
   0x6   : > { %p422_p2 = pnand %p318_p0, %p114_p1  ;;  %p360_p6 = scmp.ne.s32.totalorder %s128_s18, %s359_s19 }
   0x7   : > { %p367_p10 = scmp.lt.s32.totalorder %s128_s18, %s128_s18  ;;  %p368_p11 = scmp.lt.s32.totalorder %s359_s19, %s359_s19 }
   0x8   : > { %p338_p4 = pneg %p422_p2 }
   0x9   : > { %p369_p12 = por %p368_p11, %p367_p10 }
   0xa   : > { %p339_p5 = pnand %p342_p3, %p338_p4 }
   0xc   : > { %p361_p7 = pneg %p339_p5 }
   0xe   : > { %p362_p8 = pnand %p361_p7, %p360_p6 }
  0x10   : > { %p363_p9 = pneg %p362_p8 }
  0x12   : > { %p370_p13 = pnand %p369_p12, %p363_p9 }
  0x14   : > { %373 = shalt.err (!%p370_p13)
}
  0x15   : > { %s386_s20 = smov [#allocation3]   ;;  %151 = sbr.rel (%p422_p2) target bundleno = 378 (0x17a), region = 32 }
  0x16   : > { %341 = dma.vmem_to_smem (!%p339_p5), %s128_s18, 16, %s386_s20, [#allocation4]  }
  0x1c   : > { %379 = dma.done.wait (%p342_p3), [#allocation4], 16  }
  0x1d   : > { %381 = vsyncadd (%p342_p3), [#allocation4], 4294967280 }
  0x1e   : > { %157 = sfence }
  0x1f   : > { %p176_p0 = scmp.lt.s32.totalorder %s316_s15, 1  ;;  %vm190_vm0 = vcmask 1043456   ;;  %v197_v5 = vlaneseq  ;;  %s214_s25 = sld [smem:[#allocation3]]  ;;  %vm203_vm2 = vcmask 27648   ;;  %v387_v34 = vmov 839922192  }
  0x20   : > { %s327_s26 = sld [smem:[#allocation3 + $0x1]]  ;;  %s328_s27 = sld [smem:[#allocation3 + $0x2]]  ;;  %v240_v35 = vunpack.c.l.s4 %v387_v34 }
  0x21   : > { %s457_s15 = smov (!%p176_p0, %s316_s15), 1  ;;  %v198_v6 = vshrl.u32 %v197_v5, 7  ;;  %v200_v7 = vand.u32 127, %v197_v5  ;;  %s229_s28 = sld [smem:[#allocation2]] }
  0x22   : > { %s332_s21 = sshll.u32 %s457_s15, 3  ;;  %v241_v36 = vunpack.c.0.s8 %v240_v35 }
  0x23   : > { %s180_s24 = scalar_lea.vmem %s453_s2, %s332_s21  ;;  %v211_v8 = vsub.s32 %v200_v7, %v198_v6  ;;  %vm201_vm1 = vcmp.eq.s32.totalorder %v198_v6, %v200_v7  ;;  %s185_s4 = scalar_lea.vmem %s454_s3, %s332_s21 }
  0x24   : > { %v186_v0 = vld [vmem:[%s180_s24] sm:$0xff]  ;;  %v244_v37 = vsub.s32 %v241_v36, %v198_v6 }
  0x25   : > { %v188_v1 = vcombine.high %v186_v0, %v186_v0  ;;  %v191_v2 = vsel %vm190_vm0, %v186_v0, 0.0  ;;  %v212_v10 = vadd.s32 1, %v211_v8  ;;  %v215_v15 = vstv %s214_s25 }
  0x26   : > { %v219_v18 = vstv %s327_s26  ;;  %v223_v22 = vstv %s328_s27 }
  0x27   : > { %v192_v3 = vsel %vm190_vm0, %v188_v1, 0.0  ;;  %vm213_vm3 = vcmp.eq.s32.totalorder %v212_v10, 0  ;;  %vm217_vm4 = vcmp.eq.s32.totalorder %v212_v10, 1  ;;  %vm221_vm5 = vcmp.eq.s32.totalorder %v212_v10, 2 }
  0x28   : > { %v193_v4 = vadd.f32 %v192_v3, %v191_v2  ;;  %v216_v17 = vsel %vm213_vm3, %v215_v15, 0.0  ;;  %v230_v28 = vstv %s229_s28 }
  0x29   : > { %v220_v21 = vsel %vm217_vm4, %v219_v18, %v216_v17 }
  0x2a   : > { %194 = vadd.xlane.f32.xlu0 %v193_v4  ;;  %v224_v24 = vsel %vm221_vm5, %v223_v22, %v220_v21 }
  0xb7   : > { %v195_v9 = vpop.xlane.xlu0 %194 }
  0xb8   : > { %v196_v11 = vmul.f32 0.00390625, %v195_v9 }
  0xba   : > { %v202_v12 = vsel %vm201_vm1, %v196_v11, 0.0 }
  0xbb   : > { %v204_v13 = vsel %vm203_vm2, %v202_v12, 0.0 }
  0xbc   : > { %v205_v14 = vrot.slane %v204_v13, 4 }
  0xbe   : > { %v206_v16 = vadd.f32 %v205_v14, %v204_v13 }
  0xc0   : > { %v207_v19 = vrot.slane %v206_v16, 2 }
  0xc2   : > { %v208_v20 = vadd.f32 %v207_v19, %v206_v16 }
  0xc4   : > { %v209_v23 = vrot.slane %v208_v20, 1 }
  0xc6   : > { %v210_v25 = vadd.f32 %v209_v23, %v208_v20 }
  0xc8   : > { %v225_v26 = vmul.f32 %v224_v24, %v210_v25 }
  0xca   : > { %v226_v27 = vsel %vm203_vm2, %v225_v26, 0.0 }
  0xcb   : > { %227 = vadd.xlane.f32.xlu0 %v226_v27 }
 0x158   : > { %v228_v29 = vpop.xlane.xlu0 %227 }
 0x159   : > { %v231_v30 = vadd.f32 %v230_v28, %v228_v29 }
 0x15b   : > { %v329_v31 = vmul.f32 -1.442695, %v231_v30 }
 0x15d   : > { %355 = vpow2.f32 %v329_v31 }
 0x167   : > { %v356_v32 = vpop.eup %355 }
 0x168   : > { %v235_v33 = vadd.f32 1.0, %v356_v32 }
 0x16a   : > { %357 = vrcp.f32 %v235_v33 }
 0x174   : > { %v358_v38 = vpop.eup %357 }
 0x175   : > { %v245_v39 = vrot.slane %v358_v38, %v244_v37 }
 0x177   : > { %v247_v40 = vmul.f32 %v245_v39, %v186_v0 }
 0x179   : > { %248 = vst [vmem:[%s185_s4] sm:$0xff] %v247_v40 }
 0x17a PF: > { %s15_s14 = sadd.s32 1, %s384_s14  }
 0x17b   : > { %p12_p1 = scmp.ge.s32.totalorder %s15_s14, 4  }
 0x17d   :  { %14 = sbr.rel (!%p12_p1) target bundleno = 3 (0x3), region = 67 }
 0x184   :  { %270 = vsyncpa [#allocation4], 1 }
 0x185   :  { %272 = vsyncpa [#allocation4 + $0x1], 1 }

</bundles_post_ra>
